<compile_context>
chip_gen: v6e
topology: v6e:2x2x1
jax: 0.10.0
libtpu: 0.0.40
codegen_flags: <defaults>
</compile_context>

<pallas_src>
import jax
import jax.numpy as jnp
from jax.experimental import pallas as pl
from jax.experimental.pallas import tpu as pltpu

_SUBLANE = 8
_LANE_CANDIDATES = (1024, 512, 256, 128)          # wide, lane-dense last dims
_TARGET_STEP_BYTES = 4 * 1024 * 1024              # ~4 MiB HBM traffic per grid step
_VMEM_BUDGET_BYTES = 16 * 1024 * 1024             # double-buffered in+out blocks
_VMEM_LIMIT_BYTES = 32 * 1024 * 1024              # scoped-VMEM limit (<= v7x 64 MiB)


def _max_fusion_kernel(x_ref, o_ref):
    # x_ref: (N, R, L) -- all agents for this row tile
    # o_ref: (1, R, L) -- max over the agent (leading, non-layout) axis.
    # Each (R, L) plane has an identical tiled layout, so this lowers to a
    # plain VPU elementwise max chain -- no XLU shuffles, unmasked stores.
    o_ref[...] = jnp.max(x_ref[...], axis=0, keepdims=True)


def max_fusion(x: jax.Array) -> jax.Array:
    """Elementwise max over dim 0 of a (N, C, H, W) tensor, on TPU via Pallas."""
    n, c, h, w = x.shape
    f = c * h * w
    itemsize = jnp.dtype(x.dtype).itemsize

    # --- choose a wide lane-dense last dim that divides F (no padding needed) ---
    lane = None
    for cand in _LANE_CANDIDATES:
        if f % cand == 0:
            lane = cand
            break

    x2 = x.reshape(n, f)  # row-major reshape: free
    if lane is None:
        # Last-resort fallback: F not a multiple of 128 (rare / unrealistic
        # feature maps). Pad value is irrelevant -- padded columns are sliced
        # off before the final reshape.
        lane = 128
        f_pad = pl.cdiv(f, lane) * lane
        x2 = jnp.pad(x2, ((0, 0), (0, f_pad - f)))
    else:
        f_pad = f

    rows = f_pad // lane
    x3 = x2.reshape(n, rows, lane)

    # --- pick tile_rows: big enough to amortize per-step overhead, small enough
    # to keep the double-buffered (N input rows + 1 output row) blocks inside
    # every generation's scoped-VMEM budget.
    bytes_per_row_step = (n + 1) * lane * itemsize
    rows_target = max(1, _TARGET_STEP_BYTES // bytes_per_row_step)
    rows_vmem_cap = max(1, _VMEM_BUDGET_BYTES // (2 * bytes_per_row_step))
    tile_rows = min(rows, rows_target, rows_vmem_cap)
    if rows >= _SUBLANE:
        # Block second-to-last dim must be a multiple of 8 (or the full dim).
        tile_rows = max(_SUBLANE, (tile_rows // _SUBLANE) * _SUBLANE)
    else:
        tile_rows = rows  # full (sub-8) dim is allowed as a block dim

    num_tiles = pl.cdiv(rows, tile_rows)

    out3 = pl.pallas_call(
        _max_fusion_kernel,
        out_shape=jax.ShapeDtypeStruct((1, rows, lane), x.dtype),
        grid_spec=pltpu.PrefetchScalarGridSpec(
            num_scalar_prefetch=0,
            grid=(num_tiles,),
            in_specs=[
                # All N agents for one row tile per grid step.
                pl.BlockSpec((n, tile_rows, lane), lambda t: (0, t, 0)),
            ],
            out_specs=pl.BlockSpec((1, tile_rows, lane), lambda t: (0, t, 0)),
        ),
        compiler_params=pltpu.CompilerParams(
            # Independent row tiles -> parallel (v7x can shard across its 2 TCs).
            dimension_semantics=("parallel",),
            vmem_limit_bytes=_VMEM_LIMIT_BYTES,
        ),
        cost_estimate=pl.CostEstimate(
            flops=max(n - 1, 0) * f,
            transcendentals=0,
            bytes_accessed=(n + 1) * f * itemsize,
        ),
    )(x3)

    out_flat = out3.reshape(rows * lane)
    if f_pad != f:
        out_flat = out_flat[:f]
    return out_flat.reshape(c, h, w)


if __name__ == "__main__":
    # MaxFusion has no parameters (__init__ is empty) -> nothing to initialize.
    key = jax.random.PRNGKey(0)
    # N agents = 2, C = 4 channels, H = W = 16
    x = jax.random.normal(key, (2, 4, 16, 16), dtype=jnp.float32)

    out = max_fusion(x)
    out = jax.block_until_ready(out)

    # correctness check against plain JAX reference
    ref = jnp.max(x, axis=0)
    assert out.shape == ref.shape == (4, 16, 16)
    assert jnp.array_equal(out, ref), "Pallas MaxFusion mismatch vs reference"

    print("KERNEL_OK")
</pallas_src>

<mosaic_0001>
module attributes {stable_mosaic.version = 11 : i64} {
  func.func @_max_fusion_kernel(%arg0: i32, %arg1: memref<2x1x1024xf32, #tpu.memory_space<vmem>>, %arg2: memref<1x1x1024xf32, #tpu.memory_space<vmem>>) attributes {dimension_semantics = [#tpu.dimension_semantics<parallel>], iteration_bounds = array<i64: 1>, scalar_prefetch = 0 : i64, scratch_operands = 0 : i64, tpu.core_type = #tpu.core_type<tc>, window_params = [{transform_indices = @transform_0, window_bounds = array<i64: 2, 1, 1024>}, {transform_indices = @transform_1, window_bounds = array<i64: 1, 1, 1024>}]} {
    %c0 = arith.constant 0 : index
    %c0_0 = arith.constant 0 : index
    %c0_1 = arith.constant 0 : index
    %0 = vector.load %arg1[%c0, %c0_0, %c0_1] : memref<2x1x1024xf32, #tpu.memory_space<vmem>>, vector<2x1x1024xf32>
    %cst = arith.constant dense<0xFF800000> : vector<1x1024xf32>
    %1 = vector.multi_reduction <maximumf>, %0, %cst [0] : vector<2x1x1024xf32> to vector<1x1024xf32>
    %2 = vector.shape_cast %1 : vector<1x1024xf32> to vector<1x1x1024xf32>
    %c0_2 = arith.constant 0 : index
    %c0_3 = arith.constant 0 : index
    %c0_4 = arith.constant 0 : index
    %3 = vector.load %arg2[%c0_2, %c0_3, %c0_4] : memref<1x1x1024xf32, #tpu.memory_space<vmem>>, vector<1x1x1024xf32>
    tpu.vector_store %arg2[%c0_2, %c0_3, %c0_4], %2 {strides = array<i32>} : memref<1x1x1024xf32, #tpu.memory_space<vmem>>, vector<1x1x1024xf32>,
    return
  }
  func.func @transform_0(%arg0: i32) -> (i32, i32, i32) {
    %c0_i32 = arith.constant 0 : i32
    %c0_i32_0 = arith.constant 0 : i32
    %c0_i32_1 = arith.constant 0 : i32
    return %c0_i32, %arg0, %c0_i32_0 : i32, i32, i32
  }
  func.func @transform_1(%arg0: i32) -> (i32, i32, i32) {
    %c0_i32 = arith.constant 0 : i32
    %c0_i32_0 = arith.constant 0 : i32
    %c0_i32_1 = arith.constant 0 : i32
    return %c0_i32, %arg0, %c0_i32_0 : i32, i32, i32
  }
}

</mosaic_0001>

<bundles_post_ra>
// kernel: tpu_custom_call.1
= control target key start
LH: loop header
LB: loop body
LE: loop exit
PB: predicated region body
PF: predicated region fallthrough
CT: control target
= control target key end

     0   :  { %6 = vsyncpa [#allocation3], 0  ;;  %s110_s0 = inlined_call_operand.hbm [shape: f32[2,1,1024], index: 0, kind: input, shape index: {}]   ;;  %s111_s1 = inlined_call_operand.hbm [shape: f32[1,1,1024], index: 1, kind: output, shape index: {}]  }
   0x1   :  { %7 = vsyncpa [#allocation4], 0  ;;  %s90_s6 = smov [#allocation2]  }
   0x2   :  { %s13_s7 = sshll.u32 %s90_s6, 4  ;;  %s14_s7 = int_to_ptr.vmem [resolvable:$true] %s13_s7 }
   0x3   :  { %s54_s8 = scalar_lea.vmem %s14_s7, 256  ;;  %p59_p1 = scmp.lt.s32.totalorder %s14_s7, %s14_s7 }
   0x4   :  { %p55_p0 = scmp.ne.s32.totalorder %s14_s7, %s54_s8  ;;  %p60_p2 = scmp.lt.s32.totalorder %s54_s8, %s54_s8 }
   0x6   :  { %p61_p3 = por %p60_p2, %p59_p1 }
   0x8   :  { %p62_p4 = pnand %p61_p3, %p55_p0 }
   0xa   :  { %65 = shalt.err (!%p62_p4)
}
   0xb   :  { %s91_s9 = smov 128   ;;  %s92_s10 = smov 8  }
   0xc   :  { %19 = dma.hbm_to_vmem [thread:$0]  %s110_s0, 256, %s14_s7, [#allocation3], %s91_s9, %s91_s9, %s92_s10  }
   0xd   :  { %86 = dma.done.wait [#allocation3], 256  }
   0xe   :  { %87 = vsyncadd [#allocation3], 4294967040  ;;  %s93_s13 = smov [#allocation5]   ;;  %v23_v0 = vld [vmem:[#allocation2] sm:$0xff]  ;;  %v24_v1 = vld [vmem:[#allocation2 + $0x8] sm:$0xff] }
   0xf   :  { %s33_s14 = sshll.u32 %s93_s13, 4  ;;  %v25_v2 = vmax.f32 %v23_v0, %v24_v1  ;;  %s34_s14 = int_to_ptr.vmem [resolvable:$true] %s33_s14 }
  0x10   :  { %s66_s15 = scalar_lea.vmem %s34_s14, 128  ;;  %p71_p6 = scmp.lt.s32.totalorder %s34_s14, %s34_s14 }
  0x11   :  { %26 = vst [vmem:[#allocation5] sm:$0xff] %v25_v2  ;;  %p67_p5 = scmp.ne.s32.totalorder %s34_s14, %s66_s15  ;;  %p72_p7 = scmp.lt.s32.totalorder %s66_s15, %s66_s15 }
  0x13   :  { %p73_p8 = por %p72_p7, %p71_p6 }
  0x15   :  { %p74_p9 = pnand %p73_p8, %p67_p5 }
  0x17   :  { %77 = shalt.err (!%p74_p9)
}
  0x18   :  { %36 = dma.vmem_to_hbm [thread:$0]  %s34_s14, 128, %s111_s1, [#allocation4]  }
  0x19   :  { %88 = dma.done.wait [#allocation4], 128  }
  0x1a   :  { %89 = vsyncadd [#allocation4], 4294967168 }
  0x1b   :  { %40 = vsyncpa [#allocation3], 1 }
  0x1c   :  { %41 = vsyncpa [#allocation4], 1 }

</bundles_post_ra>
